<compile_context>
chip_gen: v7x
topology: tpu7x:2x2x1
jax: 0.10.0
libtpu: 0.0.40
codegen_flags: <defaults>
</compile_context>

<pallas_src>
import numpy as np

import jax
import jax.numpy as jnp
from jax.experimental import pallas as pl
from jax.experimental.pallas import tpu as pltpu


_LANE = 128


def _round_up(x, m):
    return ((x + m - 1) // m) * m


def _vmem_params():
    """Per-generation VMEM tuning: larger tiles on v5e/v6e (128 MiB VMEM), conservative on v7x (64 MiB)."""
    vmem = 64 * 1024 * 1024                      # safe fallback = v7x per-core physical
    try:
        vmem = int(pltpu.get_tpu_info().vmem_capacity_bytes)
    except Exception:
        pass
    limit = min(vmem // 2, 64 * 1024 * 1024)     # 32 MiB on v7x, 64 MiB on v5e/v6e
    budget = limit // 2                          # per-step working-set target (headroom for scratch)
    return budget, limit


def _tile_bytes(shape, itemsize, sublane):
    """Bytes a VMEM tile really occupies after Mosaic pads to (sublane, 128)."""
    dims = list(shape)
    dims[-1] = _round_up(dims[-1], _LANE)
    if len(dims) >= 2:
        dims[-2] = _round_up(dims[-2], sublane)
    total = itemsize
    for d in dims:
        total *= d
    return total


def _choose_tile_m(M, kkc_pad, cout_pad, in_bytes, out_bytes, budget):
    """Largest sublane-aligned row-tile of the im2col matrix whose padded, double-buffered
    working set fits `budget` (padding-aware accounting, per the review)."""
    sub_in = 32 // in_bytes                      # f32 -> 8, bf16 -> 16
    sub_out = 32 // out_bytes
    align = max(sub_in, sub_out)
    fixed = (2 * _tile_bytes((kkc_pad, cout_pad), in_bytes, sub_in)   # weights (double buffered)
             + _tile_bytes((1, cout_pad), 4, 8))                      # bias
    per_row = (2 * _round_up(kkc_pad, _LANE) * in_bytes               # patch tile (double buffered)
               + 2 * _round_up(cout_pad, _LANE) * out_bytes           # output tile (double buffered)
               + _round_up(cout_pad, _LANE) * 4)                      # f32 accumulator temp
    tm = max(align, ((budget - fixed) // per_row // align) * align)
    return int(min(tm, _round_up(M, align)))


def _matmul_bias_kernel(p_ref, w_ref, b_ref, o_ref):
    """One (image, row-tile) step: out = im2col_patch @ weights + bias.

    p_ref: (1, TM, KKC_pad)    lane-dense im2col rows (128-aligned contraction)
    w_ref: (KKC_pad, Cout_pad) im2col-flattened weights
    b_ref: (1, Cout_pad)       bias, f32
    o_ref: (1, TM, Cout_pad)   lane-dense output tile (unmasked stores)
    """
    acc = jnp.dot(p_ref[0], w_ref[...], preferred_element_type=jnp.float32)
    o_ref[0] = (acc + b_ref[...]).astype(o_ref.dtype)


def upsample_conv_layer(x, weight, bias, *, kernel_size, stride, upsample=None,
                        compute_dtype=None, output_format="NCHW"):
    """Forward pass of UpsampleConvLayer.

    x:      (N, Cin, H, W)    NCHW, like the PyTorch module
    weight: (Cout, Cin, K, K) PyTorch Conv2d layout (OIHW)
    bias:   (Cout,)
    compute_dtype: optional MXU operand dtype (e.g. jnp.bfloat16 on v6e/v7x);
                   accumulation and output stay f32.
    output_format: "NCHW" (module contract) or "NHWC" (skip the final transpose so a
                   consumer can fuse the layout change instead of an extra HBM pass).
    """
    N, Cin, H, W = x.shape
    Cout = weight.shape[0]
    K = kernel_size
    up = int(upsample) if upsample else 1
    pad = K // 2

    H_up, W_up = H * up, W * up
    Hp, Wp = H_up + 2 * pad, W_up + 2 * pad
    Ho = (Hp - K) // stride + 1
    Wo = (Wp - K) // stride + 1

    KKC = K * K * Cin
    kkc_pad = max(_LANE, _round_up(KKC, _LANE))      # full-depth, unmasked MXU contraction
    cout_pad = max(_LANE, _round_up(Cout, _LANE))    # lane-dense unmasked output stores

    in_dtype = jnp.dtype(compute_dtype) if compute_dtype is not None else jnp.dtype(x.dtype)
    in_bytes = in_dtype.itemsize
    out_bytes = jnp.dtype(x.dtype).itemsize

    budget, vmem_limit = _vmem_params()
    M = Ho * Wo
    TM = _choose_tile_m(M, kkc_pad, cout_pad, in_bytes, out_bytes, budget)
    M_pad = _round_up(M, TM)
    nt = M_pad // TM

    # ---- static index maps: fuse nearest-upsample + reflection pad + K*K taps ----
    def _src(positions, length_up):
        q = positions - pad
        q = np.where(q < 0, -q, q)                                  # reflect low edge
        q = np.where(q >= length_up, 2 * (length_up - 1) - q, q)    # reflect high edge
        return (q // up).astype(np.int32)                           # undo nearest upsample

    row_pos = (np.arange(Ho)[:, None] * stride + np.arange(K)[None, :]).reshape(-1)
    col_pos = (np.arange(Wo)[:, None] * stride + np.arange(K)[None, :]).reshape(-1)
    row_tap = jnp.asarray(_src(row_pos, H_up))      # (Ho*K,)
    col_tap = jnp.asarray(_src(col_pos, W_up))      # (Wo*K,)

    # ---- host-side im2col on the SMALL tensor: two gathers + one reshape/transpose ----
    x_nhwc = jnp.transpose(x, (0, 2, 3, 1))                         # (N, H, W, Cin)
    xh = jnp.take(x_nhwc, row_tap, axis=1)                          # (N, Ho*K, W,    Cin)
    xhw = jnp.take(xh, col_tap, axis=2)                             # (N, Ho*K, Wo*K, Cin)
    patch = xhw.reshape(N, Ho, K, Wo, K, Cin)
    patch = jnp.transpose(patch, (0, 1, 3, 2, 4, 5))                # (N, Ho, Wo, Kh, Kw, Cin)
    patch = patch.reshape(N, M, KKC)
    patch = jnp.pad(patch, ((0, 0), (0, M_pad - M), (0, kkc_pad - KKC)))
    patch = patch.astype(in_dtype)                                  # (N, M_pad, kkc_pad)

    # ---- weights / bias: OIHW -> (Kh,Kw,Cin,Cout) -> (KKC, Cout), zero-padded to 128s ----
    w = jnp.transpose(weight, (2, 3, 1, 0)).reshape(KKC, Cout)
    w2 = jnp.pad(w, ((0, kkc_pad - KKC), (0, cout_pad - Cout))).astype(in_dtype)
    b2 = jnp.pad(bias.astype(jnp.float32), (0, cout_pad - Cout)).reshape(1, cout_pad)

    cost = pl.CostEstimate(
        flops=2 * N * M_pad * kkc_pad * cout_pad,
        transcendentals=0,
        bytes_accessed=int(N * M_pad * kkc_pad * in_bytes
                           + kkc_pad * cout_pad * in_bytes
                           + cout_pad * 4
                           + N * M_pad * cout_pad * out_bytes),
    )

    out = pl.pallas_call(
        _matmul_bias_kernel,
        out_shape=jax.ShapeDtypeStruct((N, M_pad, cout_pad), x.dtype),
        grid_spec=pltpu.PrefetchScalarGridSpec(
            num_scalar_prefetch=0,
            grid=(N, nt),
            in_specs=[
                pl.BlockSpec((1, TM, kkc_pad), lambda n, i: (n, i, 0)),
                # Constant operands (same block every step; Pallas skips the re-DMA).
                # pipeline_mode=pl.Buffered(1) would also drop their redundant double
                # buffer (~weights-sized VMEM), kept at the portable default here.
                pl.BlockSpec((kkc_pad, cout_pad), lambda n, i: (0, 0)),
                pl.BlockSpec((1, cout_pad), lambda n, i: (0, 0)),
            ],
            out_specs=pl.BlockSpec((1, TM, cout_pad), lambda n, i: (n, i, 0)),
        ),
        compiler_params=pltpu.CompilerParams(
            # Both grid axes independent -> megacore / 2-TC sharding allowed on v7x.
            dimension_semantics=("parallel", "parallel"),
            vmem_limit_bytes=vmem_limit,
        ),
        cost_estimate=cost,
    )(patch, w2, b2)

    # Drop the M / channel padding and restore the module's output layout.
    out = out[:, :M, :Cout].reshape(N, Ho, Wo, Cout)
    if output_format == "NHWC":
        return out
    return jnp.transpose(out, (0, 3, 1, 2))          # NCHW, as the PyTorch module returns


def _reference(x, weight, bias, *, kernel_size, stride, upsample=None):
    """Pure-JAX reference (mirrors the PyTorch forward) for verification."""
    if upsample:
        x = jnp.repeat(jnp.repeat(x, upsample, axis=2), upsample, axis=3)
    pad = kernel_size // 2
    x = jnp.pad(x, ((0, 0), (0, 0), (pad, pad), (pad, pad)), mode="reflect")
    out = jax.lax.conv_general_dilated(
        x, weight,
        window_strides=(stride, stride),
        padding="VALID",
        dimension_numbers=("NCHW", "OIHW", "NCHW"),
    )
    return out + bias[None, :, None, None]


if __name__ == "__main__":
    key = jax.random.PRNGKey(0)
    k_x, k_w, k_b = jax.random.split(key, 3)

    # Small shapes consistent with the module: batch=2, in_ch=4, 16x16 spatial,
    # out_ch=8, kernel=3, stride=1, upsample=2 (typical style-transfer config).
    N, Cin, H, W = 2, 4, 16, 16
    Cout, K, stride, upsample = 8, 3, 1, 2

    x = jax.random.normal(k_x, (N, Cin, H, W), dtype=jnp.float32)
    weight = 0.1 * jax.random.normal(k_w, (Cout, Cin, K, K), dtype=jnp.float32)
    bias = 0.1 * jax.random.normal(k_b, (Cout,), dtype=jnp.float32)

    ref = jax.block_until_ready(
        _reference(x, weight, bias, kernel_size=K, stride=stride, upsample=upsample)
    )

    # f32 path (exact module semantics).
    out = jax.block_until_ready(
        upsample_conv_layer(x, weight, bias, kernel_size=K, stride=stride,
                            upsample=upsample)
    )
    assert out.shape == ref.shape, (out.shape, ref.shape)
    assert jnp.allclose(out, ref, atol=1e-4, rtol=1e-4), (
        float(jnp.max(jnp.abs(out - ref)))
    )

    # bf16-operand path (v6e/v7x MXU fast path, f32 accumulation).
    out_bf16 = jax.block_until_ready(
        upsample_conv_layer(x, weight, bias, kernel_size=K, stride=stride,
                            upsample=upsample, compute_dtype=jnp.bfloat16)
    )
    assert jnp.allclose(out_bf16, ref, atol=5e-2, rtol=5e-2), (
        float(jnp.max(jnp.abs(out_bf16 - ref)))
    )

    print("KERNEL_OK")
</pallas_src>

<mosaic_0001>
module attributes {stable_mosaic.version = 11 : i64} {
  func.func @_matmul_bias_kernel(%arg0: i32, %arg1: i32, %arg2: memref<1x1024x128xf32, #tpu.memory_space<vmem>>, %arg3: memref<128x128xf32, #tpu.memory_space<vmem>>, %arg4: memref<1x128xf32, #tpu.memory_space<vmem>>, %arg5: memref<1x1024x128xf32, #tpu.memory_space<vmem>>) attributes {dimension_semantics = [#tpu.dimension_semantics<parallel>, #tpu.dimension_semantics<parallel>], iteration_bounds = array<i64: 2, 1>, scalar_prefetch = 0 : i64, scratch_operands = 0 : i64, tpu.core_type = #tpu.core_type<tc>, window_params = [{transform_indices = @transform_0, window_bounds = array<i64: 1, 1024, 128>}, {pipeline_mode = #tpu.pipeline_mode<synchronous>, transform_indices = @transform_1, window_bounds = array<i64: 128, 128>}, {pipeline_mode = #tpu.pipeline_mode<synchronous>, transform_indices = @transform_2, window_bounds = array<i64: 1, 128>}, {transform_indices = @transform_3, window_bounds = array<i64: 1, 1024, 128>}]} {
    %c0 = arith.constant 0 : index
    %c0_0 = arith.constant 0 : index
    %c0_1 = arith.constant 0 : index
    %0 = vector.load %arg2[%c0, %c0_0, %c0_1] : memref<1x1024x128xf32, #tpu.memory_space<vmem>>, vector<1x1024x128xf32>
    %1 = vector.shape_cast %0 : vector<1x1024x128xf32> to vector<1024x128xf32>
    %c0_2 = arith.constant 0 : index
    %c0_3 = arith.constant 0 : index
    %2 = vector.load %arg3[%c0_2, %c0_3] : memref<128x128xf32, #tpu.memory_space<vmem>>, vector<128x128xf32>
    %cst = arith.constant dense<0.000000e+00> : vector<1024x128xf32>
    %3 = tpu.matmul %1, %2, %cst {dimension_numbers = #tpu.dot_dimension_numbers<[1], [0], [0], [1], [0, 0, 1, 1], [], []>} : vector<1024x128xf32>, vector<128x128xf32>, vector<1024x128xf32> -> vector<1024x128xf32>
    %c0_4 = arith.constant 0 : index
    %c0_5 = arith.constant 0 : index
    %4 = vector.load %arg4[%c0_4, %c0_5] : memref<1x128xf32, #tpu.memory_space<vmem>>, vector<1x128xf32>
    %5 = vector.broadcast %4 : vector<1x128xf32> to vector<1024x128xf32>
    %6 = arith.addf %3, %5 : vector<1024x128xf32>
    %c0_6 = arith.constant 0 : index
    %c0_7 = arith.constant 0 : index
    %c0_8 = arith.constant 0 : index
    %7 = vector.load %arg5[%c0_6, %c0_7, %c0_8] : memref<1x1024x128xf32, #tpu.memory_space<vmem>>, vector<1x1024x128xf32>
    %8 = vector.shape_cast %7 : vector<1x1024x128xf32> to vector<1024x128xf32>
    %9 = vector.shape_cast %6 : vector<1024x128xf32> to vector<1x1024x128xf32>
    tpu.vector_store %arg5[%c0_6, %c0_7, %c0_8], %9 {strides = array<i32>} : memref<1x1024x128xf32, #tpu.memory_space<vmem>>, vector<1x1024x128xf32>,
    return
  }
  func.func @transform_0(%arg0: i32, %arg1: i32) -> (i32, i32, i32) {
    %c0_i32 = arith.constant 0 : i32
    %c0_i32_0 = arith.constant 0 : i32
    return %arg0, %arg1, %c0_i32 : i32, i32, i32
  }
  func.func @transform_1(%arg0: i32, %arg1: i32) -> (i32, i32) {
    %c0_i32 = arith.constant 0 : i32
    %c0_i32_0 = arith.constant 0 : i32
    %c0_i32_1 = arith.constant 0 : i32
    return %c0_i32, %c0_i32_0 : i32, i32
  }
  func.func @transform_2(%arg0: i32, %arg1: i32) -> (i32, i32) {
    %c0_i32 = arith.constant 0 : i32
    %c0_i32_0 = arith.constant 0 : i32
    %c0_i32_1 = arith.constant 0 : i32
    return %c0_i32, %c0_i32_0 : i32, i32
  }
  func.func @transform_3(%arg0: i32, %arg1: i32) -> (i32, i32, i32) {
    %c0_i32 = arith.constant 0 : i32
    %c0_i32_0 = arith.constant 0 : i32
    return %arg0, %arg1, %c0_i32 : i32, i32, i32
  }
}

</mosaic_0001>

<bundles_post_ra>
// kernel: tpu_custom_call.1
= control target key start
LH: loop header
LB: loop body
LE: loop exit
PB: predicated region body
PF: predicated region fallthrough
CT: control target
= control target key end

     0   :  { %8 = vsyncpa [#allocation3], 0  ;;  %s2630_s0 = inlined_call_operand.hbm [shape: f32[2,1024,128], index: 0, kind: input, shape index: {}]   ;;  %s2631_s1 = inlined_call_operand.hbm [shape: f32[128,128], index: 1, kind: input, shape index: {}]   ;;  %s2632_s2 = inlined_call_operand.vmem [shape: f32[1,128], index: 2, kind: input, shape index: {}]   ;;  %s2633_s3 = inlined_call_operand.hbm [shape: f32[2,1024,128], index: 3, kind: output, shape index: {}]  }
   0x1   :  { %10 = vsyncpa [#allocation3 + $0x1], 0 }
   0x2   :  { %11 = vsyncpa [#allocation6], 0 }
   0x3   :  { %12 = vsyncpa [#allocation4], 0 }
   0x4   :  { %14 = vsyncpa [#allocation4 + $0x1], 0  ;;  %s2007_s12 = smov 0   ;;  %s2009_s13 = smov 0  }
   0x5   :  { %s2011_s14 = smov 0   ;;  %s2013_s15 = smov 0  }
   0x6   :  { %s2015_s16 = smov 0   ;;  %s2017_s17 = smov 0  }
   0x7 LB: > { %s1321_s18 = sadd.s32 4294967295, %s1978_s17   ;;  %s1322_s19 = sadd.s32 4294967294, %s1978_s17   ;;  %s1978_s17 = sphi %s2017_s17, %s20_s17   ;;  %s1974_s16 = sphi %s2015_s16, %s2657_s16   ;;  %s1970_s15 = sphi %s2013_s15, %s2656_s15   ;;  %s1966_s14 = sphi %s2011_s14, %s2655_s14   ;;  %s1962_s13 = sphi %s2009_s13, %s2654_s13   ;;  %s1958_s12 = sphi %s2007_s12, %s2653_s12  }
   0x8   : > { %p54_p0 = scmp.ne.s32.totalorder %s1962_s13, %s1958_s12  ;;  %p2041_p1 = scmp.eq.s32.totalorder %s1321_s18, 0 }
   0x9   : > { %p2045_p2 = scmp.eq.s32.totalorder %s1321_s18, 1  ;;  %p128_p3 = scmp.eq.s32.totalorder %s1322_s19, 1 }
   0xa   : > { %s2638_s20 = scalar_select %p2041_p1, 1, 0 }
   0xb   : > { %s2639_s21 = scalar_select %p2045_p2, 1, 0 }
   0xc   : > { %p2051_p4 = por %p2041_p1, %p54_p0  ;;  %p1323_p5 = scmp.ge.s32.totalorder %s1978_s17, 1 }
   0xd   : > { %p2056_p6 = por %p128_p3, %p54_p0  ;;  %p135_p7 = scmp.lt.s32.totalorder %s1978_s17, 3 }
   0xe   : > { %s2640_s22 = scalar_select %p2051_p4, 1, 0 }
   0xf   : > { %s2641_s23 = scalar_select %p2056_p6, 1, 0 }
  0x10   : > { %p2061_p8 = pnand %p1323_p5, %p135_p7  ;;  %s1980_s25 = smov [#allocation5]  }
  0x11   : > { %s147_s26 = sshll.u32 %s1980_s25, 4  ;;  %s32_s28 = sadd.s32 1, %s1974_s16  ;;  %s148_s26 = int_to_ptr.vmem [resolvable:$true] %s147_s26 }
  0x12   : > { %s2642_s24 = scalar_select %p2061_p8, 1, 0 }
  0x13   : > { %p1765_p9 = pneg %p2061_p8  ;;  %s1834_s4 = scalar_lea.hbm %s2631_s1, 2048 }
  0x14   : > { %p1835_p12 = scmp.ne.s32.totalorder %s2631_s1, %s1834_s4  ;;  %p1841_p5 = scmp.lt.u32.totalorder %s1834_s4, %s2631_s1 }
  0x15   : > { %p2070_p11 = pnand %p1765_p9, %p2041_p1 }
  0x17   : > { %p1836_p13 = pneg %p2070_p11 }
  0x19   : > { %p1837_p0 = pnand %p1836_p13, %p1835_p12 }
  0x1b   : > { %p1838_p3 = pneg %p1837_p0 }
  0x1d   : > { %p1843_p7 = pnand %p1841_p5, %p1838_p3 }
  0x1f   : > { %1846 = shalt.err (!%p1843_p7)
}
  0x20   : > { %s1847_s9 = scalar_lea.vmem %s148_s26, 2048  ;;  %p1855_p1 = scmp.lt.s32.totalorder %s148_s26, %s148_s26 }
  0x21   : > { %p1848_p9 = scmp.ne.s32.totalorder %s148_s26, %s1847_s9  ;;  %p1856_p4 = scmp.lt.s32.totalorder %s1847_s9, %s1847_s9 }
  0x23   : > { %p1850_p10 = pnand %p1848_p9, %p1836_p13  ;;  %p1857_p8 = por %p1856_p4, %p1855_p1 }
  0x25   : > { %p1851_p6 = pneg %p1850_p10 }
  0x27   : > { %p1858_p2 = pnand %p1857_p8, %p1851_p6 }
  0x29   : > { %1861 = shalt.err (!%p1858_p2)
}
  0x2a   : > { %s1981_s10 = smov 128   ;;  %s1982_s11 = smov 8  }
  0x2b   : > { %1768 = dma.hbm_to_vmem [thread:$0]  (!%p2070_p11), %s2631_s1, 2048, %s148_s26, [#allocation6], %s1981_s10, %s1981_s10, %s1982_s11  }
  0x2c   : > { %p34_p1 = scmp.ge.s32.totalorder %s32_s28, 2  ;;  %s41_s25 = sadd.s32 1, %s1966_s14 }
  0x2d   : > { %p48_p2 = scmp.ne.s32.totalorder %s1966_s14, %s1962_s13  ;;  %p49_p4 = scmp.eq.s32.totalorder %s1978_s17, 0 }
  0x2e   : > { %s2659_s28 = smov (%p34_p1, %s32_s28), 0  ;;  %p2645_p8 = scmp.ne.s32.totalorder %s2639_s21, 0 }
  0x2f   : > { %p2100_p6 = por %p49_p4, %p48_p2  ;;  %s36_s30 = ssub.s32 %s1974_s16, %s2659_s28 }
  0x30   : > { %p2106_p10 = por %p2645_p8, %p48_p2  ;;  %p1778_p12 = scmp.lt.s32.totalorder %s1978_s17, 2 }
  0x31   : > { %p39_p11 = scmp.eq.s32.totalorder %s36_s30, 0  ;;  %s164_s26 = sand.u32 1, %s1966_s14  }
  0x32   : > { %s1326_s4 = sshll.u32 %s164_s26, 10  ;;  %s1339_s6 = sshll.u32 %s1974_s16, 14 }
  0x33   : > { %s2115_s5 = scalar_select %p39_p11, %s1966_s14, %s41_s25  }
  0x34   : > { %s2121_s9 = scalar_lea.hbm %s2630_s0, %s1339_s6  ;;  %s168_s21 = scalar_lea.vmem [#allocation2], %s1326_s4 }
  0x35   : > { %s177_s18 = sshll.u32 %s168_s21, 4  ;;  %p2127_p13 = pnand %p1778_p12, %p2100_p6  ;;  %s2123_s18 = int_to_ptr.vmem [resolvable:$true] %s177_s18 }
  0x36   : > { %s2131_s25 = scalar_lea.sflag [#allocation3], %s164_s26  ;;  %s1862_s30 = scalar_lea.hbm %s2121_s9, 16384 }
  0x37   : > { %p1863_p0 = scmp.ne.s32.totalorder %s2121_s9, %s1862_s30  ;;  %p1864_p3 = pneg %p2127_p13 }
  0x38   : > { %s1867_s29 = scalar_lea.hbm %s2630_s0, 32768  ;;  %p1868_p9 = scmp.lt.u32.totalorder %s2121_s9, %s2630_s0 }
  0x39   : > { %p1865_p5 = pnand %p1864_p3, %p1863_p0  ;;  %p1869_p1 = scmp.lt.u32.totalorder %s1867_s29, %s1862_s30 }
  0x3a   : > { %p1871_p4 = scmp.lt.u32.totalorder %s1862_s30, %s2121_s9 }
  0x3b   : > { %p1866_p7 = pneg %p1865_p5  ;;  %p1870_p2 = por %p1869_p1, %p1868_p9 }
  0x3d   : > { %p1872_p6 = por %p1871_p4, %p1870_p2 }
  0x3f   : > { %p1873_p8 = pnand %p1872_p6, %p1866_p7 }
  0x41   : > { %1876 = shalt.err (!%p1873_p8)
}
  0x42   : > { %s1877_s26 = scalar_lea.vmem %s2123_s18, 16384  ;;  %s1983_s21 = smov [#allocation2]  }
  0x43   : > { %p1878_p12 = scmp.ne.s32.totalorder %s2123_s18, %s1877_s26  ;;  %s1882_s4 = sshll.u32 %s1983_s21, 4  ;;  %s1883_s4 = int_to_ptr.vmem [resolvable:$false] %s1882_s4 }
  0x44   : > { %s1884_s6 = scalar_lea.vmem %s1883_s4, 32768  ;;  %p1885_p5 = scmp.lt.s32.totalorder %s2123_s18, %s1883_s4 }
  0x45   : > { %p1880_p11 = pnand %p1878_p12, %p1864_p3  ;;  %p1886_p9 = scmp.lt.s32.totalorder %s1884_s6, %s1877_s26 }
  0x47   : > { %p1881_p0 = pneg %p1880_p11  ;;  %p1887_p1 = por %p1886_p9, %p1885_p5 }
  0x49   : > { %p1888_p2 = pnand %p1887_p1, %p1881_p0 }
  0x4b   : > { %1891 = shalt.err (!%p1888_p2)
}
  0x4c   : > { %1772 = dma.hbm_to_vmem [thread:$0]  (!%p2127_p13), %s2121_s9, 16384, %s2123_s18, %s2131_s25, %s1981_s10, %s1981_s10, %s1982_s11  }
  0x4d   : > { %p2648_p3 = scmp.ne.s32.totalorder %s2642_s24, 0 }
  0x4e   : > { %s2165_s30 = sand.u32 (!%p2648_p3), 1, %s1962_s13   ;;  %p2649_p7 = scmp.ne.s32.totalorder (!%p2648_p3), %s2640_s22, 0 }
  0x4f   : > { %189 = sbr.rel (%p2648_p3) target bundleno = 479 (0x1df), region = 32  ;;  %s1330_s29 = sshll.u32 (!%p2648_p3), %s2165_s30, 10 }
  0x50   : > { %s192_s7 = scalar_lea.sflag (!%p2648_p3), [#allocation3], %s2165_s30  ;;  %s2171_s19 = scalar_lea.vmem (!%p2648_p3), [#allocation2], %s1330_s29 }
  0x56   : > { %1945 = dma.done.wait (%p2649_p7), %s192_s7, 16384  }
  0x57   : > { %1947 = vsyncadd (%p2649_p7), %s192_s7, 4294950912  ;;  %p2650_p13 = scmp.ne.s32.totalorder %s2638_s20, 0 }
  0x59   : > { %1949 = dma.done.wait (%p2650_p13), [#allocation6], 2048  }
  0x5a   : > { %1951 = vsyncadd (%p2650_p13), [#allocation6], 4294965248  ;;  %v352_v0 = vld [vmem:[#allocation5] sm:$0xff]  ;;  %v353_v1 = vld [vmem:[#allocation5 + $0x8] sm:$0xff]  ;;  %s2320_s24 = scalar_lea.vmem [#allocation7], %s1330_s29  ;;  %s1340_s10 = sshll.u32 %s1970_s15, 14 }
  0x5b   : > { %v354_v2 = vld [vmem:[#allocation5 + $0x10] sm:$0xff]  ;;  %v1709_v3 = vpack.c.bf16 %v353_v1, %v352_v0  ;;  %v355_v4 = vld [vmem:[#allocation5 + $0x18] sm:$0xff]  ;;  %v356_v6 = vld [vmem:[#allocation5 + $0x20] sm:$0xff]  ;;  %s1224_s11 = sshll.u32 %s2320_s24, 4  ;;  %s2573_s18 = scalar_lea.hbm %s2633_s3, %s1340_s10  ;;  %s2575_s11 = int_to_ptr.vmem [resolvable:$true] %s1224_s11 }
  0x5c   : > { %v1713_v5 = vpack.c.bf16 %v355_v4, %v354_v2  ;;  %v357_v7 = vld [vmem:[#allocation5 + $0x28] sm:$0xff]  ;;  %v224_v9 = vld [vmem:[%s2171_s19] sm:$0xff]  ;;  %v358_v11 = vld [vmem:[#allocation5 + $0x30] sm:$0xff]  ;;  %s1209_s25 = scalar_lea.sflag [#allocation4], %s2165_s30  ;;  %s1892_s8 = scalar_lea.vmem %s2575_s11, 16384 }
  0x5d   : > { %1710 = vmatprep.subr.bf16.mxu0 %v1709_v3  ;;  %1741 = vmatprep.subr.bf16.mxu1 %v1709_v3  ;;  %v1717_v8 = vpack.c.bf16 %v357_v7, %v356_v6  ;;  %v288_v10 = vld [vmem:[%s2171_s19 + $0x200] sm:$0xff]  ;;  %v359_v12 = vld [vmem:[#allocation5 + $0x38] sm:$0xff]  ;;  %v361_v15 = vld [vmem:[#allocation5 + $0x48] sm:$0xff]  ;;  %p1893_p4 = scmp.ne.s32.totalorder %s2575_s11, %s1892_s8  ;;  %s1984_s26 = smov [#allocation7]  }
  0x5e   : > { %1712 = vmatpush3.bf16.msra.mxu0 %v1709_v3  ;;  %1749 = vmatpush3.bf16.msra.mxu1 %v1709_v3  ;;  %v1721_v13 = vpack.c.bf16 %v359_v12, %v358_v11  ;;  %v360_v14 = vld [vmem:[#allocation5 + $0x40] sm:$0xff]  ;;  %v362_v17 = vld [vmem:[#allocation5 + $0x50] sm:$0xff]  ;;  %v363_v18 = vld [vmem:[#allocation5 + $0x58] sm:$0xff]  ;;  %s1896_s21 = sshll.u32 %s1984_s26, 4  ;;  %s1897_s21 = int_to_ptr.vmem [resolvable:$false] %s1896_s21 }
  0x5f   : > { %1714 = vmatprep.subr.bf16.mxu0 %v1713_v5  ;;  %1742 = vmatprep.subr.bf16.mxu1 %v1713_v5  ;;  %v1725_v16 = vpack.c.bf16 %v361_v15, %v360_v14  ;;  %v1729_v19 = vpack.c.bf16 %v363_v18, %v362_v17  ;;  %v364_v20 = vld [vmem:[#allocation5 + $0x60] sm:$0xff]  ;;  %v365_v21 = vld [vmem:[#allocation5 + $0x68] sm:$0xff]  ;;  %v366_v23 = vld [vmem:[#allocation5 + $0x70] sm:$0xff]  ;;  %p1894_p6 = pnand %p1893_p4, %p2106_p10  ;;  %s1898_s4 = scalar_lea.vmem %s1897_s21, 32768 }
  0x60   : > { %1517 = vmatprep.mubr.f32.mxu0 %v224_v9  ;;  %1613 = vmatprep.mubr.f32.mxu1 %v288_v10  ;;  %v1733_v22 = vpack.c.bf16 %v365_v21, %v364_v20  ;;  %v367_v24 = vld [vmem:[#allocation5 + $0x78] sm:$0xff]  ;;  %v225_v26 = vld [vmem:[%s2171_s19 + $0x8] sm:$0xff]  ;;  %v226_v28 = vld [vmem:[%s2171_s19 + $0x10] sm:$0xff]  ;;  %p1899_p12 = scmp.lt.s32.totalorder %s2575_s11, %s1897_s21  ;;  %p1900_p11 = scmp.lt.s32.totalorder %s1898_s4, %s1892_s8 }
  0x61   : > { %v1737_v25 = vpack.c.bf16 %v367_v24, %v366_v23  ;;  %v289_v27 = vld [vmem:[%s2171_s19 + $0x208] sm:$0xff]  ;;  %v290_v29 = vld [vmem:[%s2171_s19 + $0x210] sm:$0xff]  ;;  %v227_v30 = vld [vmem:[%s2171_s19 + $0x18] sm:$0xff]  ;;  %p1895_p8 = pneg %p1894_p6 }
  0x62   : > { %1716 = vmatpush3.bf16.msra.mxu0 %v1713_v5  ;;  %1750 = vmatpush3.bf16.msra.mxu1 %v1713_v5  ;;  %v291_v31 = vld [vmem:[%s2171_s19 + $0x218] sm:$0xff]  ;;  %v228_v32 = vld [vmem:[%s2171_s19 + $0x20] sm:$0xff]  ;;  %v229_v34 = vld [vmem:[%s2171_s19 + $0x28] sm:$0xff]  ;;  %p1901_p0 = por %p1900_p11, %p1899_p12 }
  0x63   : > { %1718 = vmatprep.subr.bf16.mxu0 %v1717_v8  ;;  %1743 = vmatprep.subr.bf16.mxu1 %v1717_v8  ;;  %v292_v33 = vld [vmem:[%s2171_s19 + $0x220] sm:$0xff]  ;;  %v293_v35 = vld [vmem:[%s2171_s19 + $0x228] sm:$0xff]  ;;  %v230_v36 = vld [vmem:[%s2171_s19 + $0x30] sm:$0xff] }
  0x64   : > { %v294_v37 = vld [vmem:[%s2171_s19 + $0x230] sm:$0xff]  ;;  %v231_v38 = vld [vmem:[%s2171_s19 + $0x38] sm:$0xff]  ;;  %v232_v40 = vld [vmem:[%s2171_s19 + $0x40] sm:$0xff]  ;;  %p1902_p5 = pnand %p1901_p0, %p1895_p8 }
  0x65   : > { %v295_v39 = vld [vmem:[%s2171_s19 + $0x238] sm:$0xff]  ;;  %v296_v41 = vld [vmem:[%s2171_s19 + $0x240] sm:$0xff]  ;;  %v233_v42 = vld [vmem:[%s2171_s19 + $0x48] sm:$0xff] }
  0x66   : > { %1720 = vmatpush3.bf16.msra.mxu0 %v1717_v8  ;;  %1751 = vmatpush3.bf16.msra.mxu1 %v1717_v8  ;;  %v297_v43 = vld [vmem:[%s2171_s19 + $0x248] sm:$0xff]  ;;  %v234_v44 = vld [vmem:[%s2171_s19 + $0x50] sm:$0xff]  ;;  %v235_v46 = vld [vmem:[%s2171_s19 + $0x58] sm:$0xff] }
  0x67   : > { %1722 = vmatprep.subr.bf16.mxu0 %v1721_v13  ;;  %1744 = vmatprep.subr.bf16.mxu1 %v1721_v13  ;;  %v298_v45 = vld [vmem:[%s2171_s19 + $0x250] sm:$0xff]  ;;  %v299_v47 = vld [vmem:[%s2171_s19 + $0x258] sm:$0xff]  ;;  %v236_v48 = vld [vmem:[%s2171_s19 + $0x60] sm:$0xff] }
  0x68   : > { %v300_v49 = vld [vmem:[%s2171_s19 + $0x260] sm:$0xff]  ;;  %v237_v50 = vld [vmem:[%s2171_s19 + $0x68] sm:$0xff]  ;;  %v238_v52 = vld [vmem:[%s2171_s19 + $0x70] sm:$0xff] }
  0x69   : > { %v301_v51 = vld [vmem:[%s2171_s19 + $0x268] sm:$0xff]  ;;  %v302_v53 = vld [vmem:[%s2171_s19 + $0x270] sm:$0xff]  ;;  %v239_v54 = vld [vmem:[%s2171_s19 + $0x78] sm:$0xff] }
  0x6a   : > { %1724 = vmatpush3.bf16.msra.mxu0 %v1721_v13  ;;  %1752 = vmatpush3.bf16.msra.mxu1 %v1721_v13  ;;  %v303_v55 = vld [vmem:[%s2171_s19 + $0x278] sm:$0xff]  ;;  %v240_v56 = vld [vmem:[%s2171_s19 + $0x80] sm:$0xff]  ;;  %v241_v58 = vld [vmem:[%s2171_s19 + $0x88] sm:$0xff] }
  0x6b   : > { %1726 = vmatprep.subr.bf16.mxu0 %v1725_v16  ;;  %1745 = vmatprep.subr.bf16.mxu1 %v1725_v16  ;;  %v304_v57 = vld [vmem:[%s2171_s19 + $0x280] sm:$0xff]  ;;  %v305_v59 = vld [vmem:[%s2171_s19 + $0x288] sm:$0xff]  ;;  %v242_v60 = vld [vmem:[%s2171_s19 + $0x90] sm:$0xff] }
  0x6c   : > { %v306_v61 = vld [vmem:[%s2171_s19 + $0x290] sm:$0xff]  ;;  %v243_v62 = vld [vmem:[%s2171_s19 + $0x98] sm:$0xff]  ;;  %v244_v0 = vld [vmem:[%s2171_s19 + $0xa0] sm:$0xff] }
  0x6d   : > { %v307_v63 = vld [vmem:[%s2171_s19 + $0x298] sm:$0xff]  ;;  %v308_v1 = vld [vmem:[%s2171_s19 + $0x2a0] sm:$0xff]  ;;  %v245_v2 = vld [vmem:[%s2171_s19 + $0xa8] sm:$0xff] }
  0x6e   : > { %1728 = vmatpush3.bf16.msra.mxu0 %v1725_v16  ;;  %1753 = vmatpush3.bf16.msra.mxu1 %v1725_v16  ;;  %v309_v3 = vld [vmem:[%s2171_s19 + $0x2a8] sm:$0xff]  ;;  %v246_v4 = vld [vmem:[%s2171_s19 + $0xb0] sm:$0xff]  ;;  %v247_v6 = vld [vmem:[%s2171_s19 + $0xb8] sm:$0xff] }
  0x6f   : > { %1730 = vmatprep.subr.bf16.mxu0 %v1729_v19  ;;  %1746 = vmatprep.subr.bf16.mxu1 %v1729_v19  ;;  %v310_v5 = vld [vmem:[%s2171_s19 + $0x2b0] sm:$0xff]  ;;  %v311_v7 = vld [vmem:[%s2171_s19 + $0x2b8] sm:$0xff]  ;;  %v248_v8 = vld [vmem:[%s2171_s19 + $0xc0] sm:$0xff] }
  0x70   : > { %v312_v9 = vld [vmem:[%s2171_s19 + $0x2c0] sm:$0xff]  ;;  %v249_v10 = vld [vmem:[%s2171_s19 + $0xc8] sm:$0xff]  ;;  %v250_v12 = vld [vmem:[%s2171_s19 + $0xd0] sm:$0xff] }
  0x71   : > { %v313_v11 = vld [vmem:[%s2171_s19 + $0x2c8] sm:$0xff]  ;;  %v314_v13 = vld [vmem:[%s2171_s19 + $0x2d0] sm:$0xff]  ;;  %v251_v14 = vld [vmem:[%s2171_s19 + $0xd8] sm:$0xff] }
  0x72   : > { %1732 = vmatpush3.bf16.msra.mxu0 %v1729_v19  ;;  %1754 = vmatpush3.bf16.msra.mxu1 %v1729_v19  ;;  %v315_v15 = vld [vmem:[%s2171_s19 + $0x2d8] sm:$0xff]  ;;  %v252_v16 = vld [vmem:[%s2171_s19 + $0xe0] sm:$0xff]  ;;  %v253_v18 = vld [vmem:[%s2171_s19 + $0xe8] sm:$0xff] }
  0x73   : > { %1734 = vmatprep.subr.bf16.mxu0 %v1733_v22  ;;  %1747 = vmatprep.subr.bf16.mxu1 %v1733_v22  ;;  %v316_v17 = vld [vmem:[%s2171_s19 + $0x2e0] sm:$0xff]  ;;  %v317_v19 = vld [vmem:[%s2171_s19 + $0x2e8] sm:$0xff]  ;;  %v254_v20 = vld [vmem:[%s2171_s19 + $0xf0] sm:$0xff] }
  0x74   : > { %v318_v21 = vld [vmem:[%s2171_s19 + $0x2f0] sm:$0xff]  ;;  %v319_v23 = vld [vmem:[%s2171_s19 + $0x2f8] sm:$0xff]  ;;  %v256_v24 = vld [vmem:[%s2171_s19 + $0x100] sm:$0xff] }
  0x76   : > { %1736 = vmatpush3.bf16.msra.mxu0 %v1733_v22  ;;  %1755 = vmatpush3.bf16.msra.mxu1 %v1733_v22  ;;  %v255_v22 = vld [vmem:[%s2171_s19 + $0xf8] sm:$0xff] }
  0x77   : > { %1738 = vmatprep.subr.bf16.mxu0 %v1737_v25  ;;  %1748 = vmatprep.subr.bf16.mxu1 %v1737_v25 }
  0x7a   : > { %1740 = vmatpush3.bf16.msra.mxu0 %v1737_v25  ;;  %1756 = vmatpush3.bf16.msra.mxu1 %v1737_v25  ;;  %v320_v25 = vld [vmem:[%s2171_s19 + $0x300] sm:$0xff] }
  0x7d   : > { %1518 = vmatmul.mubr.f32.vlgmr.msra.gmra.mrb[0].mxu0 %v225_v26  ;;  %1614 = vmatmul.mubr.f32.vlgmr.msra.gmra.mrb[0].mxu1 %v289_v27  ;;  %v257_v26 = vld [vmem:[%s2171_s19 + $0x108] sm:$0xff] }
  0x7e   : > { %1520 = vmatprep.mubr.f32.mxu0 %v226_v28  ;;  %1616 = vmatprep.mubr.f32.mxu1 %v290_v29  ;;  %v321_v27 = vld [vmem:[%s2171_s19 + $0x308] sm:$0xff]  ;;  %v258_v28 = vld [vmem:[%s2171_s19 + $0x110] sm:$0xff] }
  0x7f   : > { %v322_v29 = vld [vmem:[%s2171_s19 + $0x310] sm:$0xff] }
  0x81   : > { %1521 = vmatmul.mubr.f32.gmra.mrb[2].mxu0 %v227_v30  ;;  %1617 = vmatmul.mubr.f32.gmra.mrb[2].mxu1 %v291_v31  ;;  %v259_v30 = vld [vmem:[%s2171_s19 + $0x118] sm:$0xff] }
  0x82   : > { %1523 = vmatprep.mubr.f32.mxu0 %v228_v32  ;;  %1619 = vmatprep.mubr.f32.mxu1 %v292_v33  ;;  %v323_v31 = vld [vmem:[%s2171_s19 + $0x318] sm:$0xff]  ;;  %v260_v32 = vld [vmem:[%s2171_s19 + $0x120] sm:$0xff] }
  0x83   : > { %v324_v33 = vld [vmem:[%s2171_s19 + $0x320] sm:$0xff] }
  0x85   : > { %1524 = vmatmul.mubr.f32.gmra.mrb[4].mxu0 %v229_v34  ;;  %1620 = vmatmul.mubr.f32.gmra.mrb[4].mxu1 %v293_v35  ;;  %v261_v34 = vld [vmem:[%s2171_s19 + $0x128] sm:$0xff] }
  0x86   : > { %1526 = vmatprep.mubr.f32.mxu0 %v230_v36  ;;  %1622 = vmatprep.mubr.f32.mxu1 %v294_v37  ;;  %v325_v35 = vld [vmem:[%s2171_s19 + $0x328] sm:$0xff]  ;;  %v262_v36 = vld [vmem:[%s2171_s19 + $0x130] sm:$0xff] }
  0x87   : > { %v326_v37 = vld [vmem:[%s2171_s19 + $0x330] sm:$0xff] }
  0x89   : > { %1527 = vmatmul.mubr.f32.gmra.mrb[6].mxu0 %v231_v38  ;;  %1623 = vmatmul.mubr.f32.gmra.mrb[6].mxu1 %v295_v39  ;;  %v263_v38 = vld [vmem:[%s2171_s19 + $0x138] sm:$0xff] }
  0x8a   : > { %1529 = vmatprep.mubr.f32.mxu0 %v232_v40  ;;  %1625 = vmatprep.mubr.f32.mxu1 %v296_v41  ;;  %v327_v39 = vld [vmem:[%s2171_s19 + $0x338] sm:$0xff]  ;;  %v264_v40 = vld [vmem:[%s2171_s19 + $0x140] sm:$0xff] }
  0x8b   : > { %v328_v41 = vld [vmem:[%s2171_s19 + $0x340] sm:$0xff] }
  0x8d   : > { %1530 = vmatmul.mubr.f32.gmra.mrb[8].mxu0 %v233_v42  ;;  %1626 = vmatmul.mubr.f32.gmra.mrb[8].mxu1 %v297_v43  ;;  %v265_v42 = vld [vmem:[%s2171_s19 + $0x148] sm:$0xff] }
  0x8e   : > { %1532 = vmatprep.mubr.f32.mxu0 %v234_v44  ;;  %1628 = vmatprep.mubr.f32.mxu1 %v298_v45  ;;  %v329_v43 = vld [vmem:[%s2171_s19 + $0x348] sm:$0xff]  ;;  %v266_v44 = vld [vmem:[%s2171_s19 + $0x150] sm:$0xff] }
  0x8f   : > { %v330_v45 = vld [vmem:[%s2171_s19 + $0x350] sm:$0xff] }
  0x91   : > { %1533 = vmatmul.mubr.f32.gmra.mrb[10].mxu0 %v235_v46  ;;  %1629 = vmatmul.mubr.f32.gmra.mrb[10].mxu1 %v299_v47  ;;  %v267_v46 = vld [vmem:[%s2171_s19 + $0x158] sm:$0xff] }
  0x92   : > { %1535 = vmatprep.mubr.f32.mxu0 %v236_v48  ;;  %1631 = vmatprep.mubr.f32.mxu1 %v300_v49  ;;  %v331_v47 = vld [vmem:[%s2171_s19 + $0x358] sm:$0xff]  ;;  %v268_v48 = vld [vmem:[%s2171_s19 + $0x160] sm:$0xff] }
  0x93   : > { %v332_v49 = vld [vmem:[%s2171_s19 + $0x360] sm:$0xff] }
  0x95   : > { %1536 = vmatmul.mubr.f32.gmra.mrb[12].mxu0 %v237_v50  ;;  %1632 = vmatmul.mubr.f32.gmra.mrb[12].mxu1 %v301_v51  ;;  %v269_v50 = vld [vmem:[%s2171_s19 + $0x168] sm:$0xff] }
  0x96   : > { %1538 = vmatprep.mubr.f32.mxu0 %v238_v52  ;;  %1634 = vmatprep.mubr.f32.mxu1 %v302_v53  ;;  %v333_v51 = vld [vmem:[%s2171_s19 + $0x368] sm:$0xff]  ;;  %v270_v52 = vld [vmem:[%s2171_s19 + $0x170] sm:$0xff] }
  0x97   : > { %v334_v53 = vld [vmem:[%s2171_s19 + $0x370] sm:$0xff] }
  0x99   : > { %1539 = vmatmul.mubr.f32.gmra.mrb[14].mxu0 %v239_v54  ;;  %1635 = vmatmul.mubr.f32.gmra.mrb[14].mxu1 %v303_v55  ;;  %v271_v54 = vld [vmem:[%s2171_s19 + $0x178] sm:$0xff] }
  0x9a   : > { %1541 = vmatprep.mubr.f32.mxu0 %v240_v56  ;;  %1637 = vmatprep.mubr.f32.mxu1 %v304_v57  ;;  %v335_v55 = vld [vmem:[%s2171_s19 + $0x378] sm:$0xff]  ;;  %v272_v56 = vld [vmem:[%s2171_s19 + $0x180] sm:$0xff] }
  0x9b   : > { %v336_v57 = vld [vmem:[%s2171_s19 + $0x380] sm:$0xff] }
  0x9d   : > { %1542 = vmatmul.mubr.f32.gmra.mrb[16].mxu0 %v241_v58  ;;  %1638 = vmatmul.mubr.f32.gmra.mrb[16].mxu1 %v305_v59  ;;  %v273_v58 = vld [vmem:[%s2171_s19 + $0x188] sm:$0xff] }
  0x9e   : > { %1544 = vmatprep.mubr.f32.mxu0 %v242_v60  ;;  %1640 = vmatprep.mubr.f32.mxu1 %v306_v61  ;;  %v337_v59 = vld [vmem:[%s2171_s19 + $0x388] sm:$0xff]  ;;  %v274_v60 = vld [vmem:[%s2171_s19 + $0x190] sm:$0xff] }
  0x9f   : > { %v338_v61 = vld [vmem:[%s2171_s19 + $0x390] sm:$0xff] }
  0xa1   : > { %1545 = vmatmul.mubr.f32.gmra.mrb[18].mxu0 %v243_v62  ;;  %1641 = vmatmul.mubr.f32.gmra.mrb[18].mxu1 %v307_v63  ;;  %v275_v62 = vld [vmem:[%s2171_s19 + $0x198] sm:$0xff] }
  0xa2   : > { %1547 = vmatprep.mubr.f32.mxu0 %v244_v0  ;;  %1643 = vmatprep.mubr.f32.mxu1 %v308_v1  ;;  %v339_v63 = vld [vmem:[%s2171_s19 + $0x398] sm:$0xff]  ;;  %v276_v0 = vld [vmem:[%s2171_s19 + $0x1a0] sm:$0xff] }
  0xa3   : > { %v340_v1 = vld [vmem:[%s2171_s19 + $0x3a0] sm:$0xff] }
  0xa5   : > { %1548 = vmatmul.mubr.f32.gmra.mrb[20].mxu0 %v245_v2  ;;  %1644 = vmatmul.mubr.f32.gmra.mrb[20].mxu1 %v309_v3  ;;  %v277_v2 = vld [vmem:[%s2171_s19 + $0x1a8] sm:$0xff] }
  0xa6   : > { %1550 = vmatprep.mubr.f32.mxu0 %v246_v4  ;;  %1646 = vmatprep.mubr.f32.mxu1 %v310_v5  ;;  %v341_v3 = vld [vmem:[%s2171_s19 + $0x3a8] sm:$0xff]  ;;  %v278_v4 = vld [vmem:[%s2171_s19 + $0x1b0] sm:$0xff] }
  0xa7   : > { %v342_v5 = vld [vmem:[%s2171_s19 + $0x3b0] sm:$0xff] }
  0xa9   : > { %1551 = vmatmul.mubr.f32.gmra.mrb[22].mxu0 %v247_v6  ;;  %1647 = vmatmul.mubr.f32.gmra.mrb[22].mxu1 %v311_v7  ;;  %v279_v6 = vld [vmem:[%s2171_s19 + $0x1b8] sm:$0xff] }
  0xaa   : > { %1553 = vmatprep.mubr.f32.mxu0 %v248_v8  ;;  %1649 = vmatprep.mubr.f32.mxu1 %v312_v9  ;;  %v343_v7 = vld [vmem:[%s2171_s19 + $0x3b8] sm:$0xff]  ;;  %v280_v8 = vld [vmem:[%s2171_s19 + $0x1c0] sm:$0xff] }
  0xab   : > { %v344_v9 = vld [vmem:[%s2171_s19 + $0x3c0] sm:$0xff] }
  0xad   : > { %1554 = vmatmul.mubr.f32.gmra.mrb[24].mxu0 %v249_v10  ;;  %1650 = vmatmul.mubr.f32.gmra.mrb[24].mxu1 %v313_v11  ;;  %v281_v10 = vld [vmem:[%s2171_s19 + $0x1c8] sm:$0xff] }
  0xae   : > { %1556 = vmatprep.mubr.f32.mxu0 %v250_v12  ;;  %1652 = vmatprep.mubr.f32.mxu1 %v314_v13  ;;  %v345_v11 = vld [vmem:[%s2171_s19 + $0x3c8] sm:$0xff]  ;;  %v282_v12 = vld [vmem:[%s2171_s19 + $0x1d0] sm:$0xff] }
  0xaf   : > { %v346_v13 = vld [vmem:[%s2171_s19 + $0x3d0] sm:$0xff] }
  0xb1   : > { %1557 = vmatmul.mubr.f32.gmra.mrb[26].mxu0 %v251_v14  ;;  %1653 = vmatmul.mubr.f32.gmra.mrb[26].mxu1 %v315_v15  ;;  %v283_v14 = vld [vmem:[%s2171_s19 + $0x1d8] sm:$0xff] }
  0xb2   : > { %1559 = vmatprep.mubr.f32.mxu0 %v252_v16  ;;  %1655 = vmatprep.mubr.f32.mxu1 %v316_v17  ;;  %v347_v15 = vld [vmem:[%s2171_s19 + $0x3d8] sm:$0xff]  ;;  %v284_v16 = vld [vmem:[%s2171_s19 + $0x1e0] sm:$0xff] }
  0xb3   : > { %v348_v17 = vld [vmem:[%s2171_s19 + $0x3e0] sm:$0xff] }
  0xb5   : > { %1560 = vmatmul.mubr.f32.gmra.mrb[28].mxu0 %v253_v18  ;;  %1656 = vmatmul.mubr.f32.gmra.mrb[28].mxu1 %v317_v19  ;;  %v285_v18 = vld [vmem:[%s2171_s19 + $0x1e8] sm:$0xff] }
  0xb6   : > { %1562 = vmatprep.mubr.f32.mxu0 %v254_v20  ;;  %1658 = vmatprep.mubr.f32.mxu1 %v318_v21  ;;  %v349_v19 = vld [vmem:[%s2171_s19 + $0x3e8] sm:$0xff]  ;;  %v286_v20 = vld [vmem:[%s2171_s19 + $0x1f0] sm:$0xff] }
  0xb7   : > { %v350_v21 = vld [vmem:[%s2171_s19 + $0x3f0] sm:$0xff] }
  0xb9   : > { %1563 = vmatmul.mubr.f32.gmra.mrb[30].mxu0 %v255_v22  ;;  %1659 = vmatmul.mubr.f32.gmra.mrb[30].mxu1 %v319_v23  ;;  %v287_v22 = vld [vmem:[%s2171_s19 + $0x1f8] sm:$0xff] }
  0xba   : > { %1565 = vmatprep.mubr.f32.mxu0 %v256_v24  ;;  %1661 = vmatprep.mubr.f32.mxu1 %v320_v25  ;;  %v351_v23 = vld [vmem:[%s2171_s19 + $0x3f8] sm:$0xff]  ;;  %v2312_v24 = vld [vmem:[%s2632_s2] ss:$0 sm:$0xff] }
  0xbd   : > { %1566 = vmatmul.mubr.f32.gmra.mrb[32].mxu0 %v257_v26  ;;  %1662 = vmatmul.mubr.f32.gmra.mrb[32].mxu1 %v321_v27 }
  0xbe   : > { %1568 = vmatprep.mubr.f32.mxu0 %v258_v28  ;;  %1664 = vmatprep.mubr.f32.mxu1 %v322_v29 }
  0xc1   : > { %1569 = vmatmul.mubr.f32.gmra.mrb[34].mxu0 %v259_v30  ;;  %1665 = vmatmul.mubr.f32.gmra.mrb[34].mxu1 %v323_v31 }
  0xc2   : > { %1571 = vmatprep.mubr.f32.mxu0 %v260_v32  ;;  %1667 = vmatprep.mubr.f32.mxu1 %v324_v33 }
  0xc5   : > { %1572 = vmatmul.mubr.f32.gmra.mrb[36].mxu0 %v261_v34  ;;  %1668 = vmatmul.mubr.f32.gmra.mrb[36].mxu1 %v325_v35 }
  0xc6   : > { %1574 = vmatprep.mubr.f32.mxu0 %v262_v36  ;;  %1670 = vmatprep.mubr.f32.mxu1 %v326_v37 }
  0xc9   : > { %1575 = vmatmul.mubr.f32.gmra.mrb[38].mxu0 %v263_v38  ;;  %1671 = vmatmul.mubr.f32.gmra.mrb[38].mxu1 %v327_v39 }
  0xca   : > { %1577 = vmatprep.mubr.f32.mxu0 %v264_v40  ;;  %1673 = vmatprep.mubr.f32.mxu1 %v328_v41 }
  0xcd   : > { %1578 = vmatmul.mubr.f32.gmra.mrb[40].mxu0 %v265_v42  ;;  %1674 = vmatmul.mubr.f32.gmra.mrb[40].mxu1 %v329_v43 }
  0xce   : > { %1580 = vmatprep.mubr.f32.mxu0 %v266_v44  ;;  %1676 = vmatprep.mubr.f32.mxu1 %v330_v45 }
  0xd1   : > { %1581 = vmatmul.mubr.f32.gmra.mrb[42].mxu0 %v267_v46  ;;  %1677 = vmatmul.mubr.f32.gmra.mrb[42].mxu1 %v331_v47 }
  0xd2   : > { %1583 = vmatprep.mubr.f32.mxu0 %v268_v48  ;;  %1679 = vmatprep.mubr.f32.mxu1 %v332_v49 }
  0xd5   : > { %1584 = vmatmul.mubr.f32.gmra.mrb[44].mxu0 %v269_v50  ;;  %1680 = vmatmul.mubr.f32.gmra.mrb[44].mxu1 %v333_v51 }
  0xd6   : > { %1586 = vmatprep.mubr.f32.mxu0 %v270_v52  ;;  %1682 = vmatprep.mubr.f32.mxu1 %v334_v53 }
  0xd9   : > { %1587 = vmatmul.mubr.f32.gmra.mrb[46].mxu0 %v271_v54  ;;  %1683 = vmatmul.mubr.f32.gmra.mrb[46].mxu1 %v335_v55 }
  0xda   : > { %1589 = vmatprep.mubr.f32.mxu0 %v272_v56  ;;  %1685 = vmatprep.mubr.f32.mxu1 %v336_v57 }
  0xdd   : > { %1590 = vmatmul.mubr.f32.gmra.mrb[48].mxu0 %v273_v58  ;;  %1686 = vmatmul.mubr.f32.gmra.mrb[48].mxu1 %v337_v59 }
  0xde   : > { %1592 = vmatprep.mubr.f32.mxu0 %v274_v60  ;;  %1688 = vmatprep.mubr.f32.mxu1 %v338_v61 }
  0xe1   : > { %1593 = vmatmul.mubr.f32.gmra.mrb[50].mxu0 %v275_v62  ;;  %1689 = vmatmul.mubr.f32.gmra.mrb[50].mxu1 %v339_v63 }
  0xe2   : > { %1595 = vmatprep.mubr.f32.mxu0 %v276_v0  ;;  %1691 = vmatprep.mubr.f32.mxu1 %v340_v1 }
  0xe5   : > { %1596 = vmatmul.mubr.f32.gmra.mrb[52].mxu0 %v277_v2  ;;  %1692 = vmatmul.mubr.f32.gmra.mrb[52].mxu1 %v341_v3 }
  0xe6   : > { %1598 = vmatprep.mubr.f32.mxu0 %v278_v4  ;;  %1694 = vmatprep.mubr.f32.mxu1 %v342_v5 }
  0xe9   : > { %1599 = vmatmul.mubr.f32.gmra.mrb[54].mxu0 %v279_v6  ;;  %1695 = vmatmul.mubr.f32.gmra.mrb[54].mxu1 %v343_v7 }
  0xea   : > { %1601 = vmatprep.mubr.f32.mxu0 %v280_v8  ;;  %1697 = vmatprep.mubr.f32.mxu1 %v344_v9 }
  0xed   : > { %1602 = vmatmul.mubr.f32.gmra.mrb[56].mxu0 %v281_v10  ;;  %1698 = vmatmul.mubr.f32.gmra.mrb[56].mxu1 %v345_v11 }
  0xee   : > { %1604 = vmatprep.mubr.f32.mxu0 %v282_v12  ;;  %1700 = vmatprep.mubr.f32.mxu1 %v346_v13 }
  0xf1   : > { %1605 = vmatmul.mubr.f32.gmra.mrb[58].mxu0 %v283_v14  ;;  %1701 = vmatmul.mubr.f32.gmra.mrb[58].mxu1 %v347_v15 }
  0xf2   : > { %1607 = vmatprep.mubr.f32.mxu0 %v284_v16  ;;  %1703 = vmatprep.mubr.f32.mxu1 %v348_v17 }
  0xf5   : > { %1608 = vmatmul.mubr.f32.gmra.mrb[60].mxu0 %v285_v18  ;;  %1704 = vmatmul.mubr.f32.gmra.mrb[60].mxu1 %v349_v19 }
  0xf6   : > { %1610 = vmatprep.mubr.f32.mxu0 %v286_v20  ;;  %1706 = vmatprep.mubr.f32.mxu1 %v350_v21 }
  0xf9   : > { %1611 = vmatmul.mubr.f32.gmra.mrb[62].mxu0 %v287_v22  ;;  %1707 = vmatmul.mubr.f32.gmra.mrb[62].mxu1 %v351_v23 }
 0x150   : > { %v1519_v25 = vpop.f32.mrb[0].mxu0  ;;  %v1615_v26 = vpop.f32.mrb[0].mxu1 }
 0x151   : > { %v447_v27 = vadd.f32 %v1519_v25, %v2312_v24  ;;  %v767_v28 = vadd.f32 %v1615_v26, %v2312_v24  ;;  %v441_v29 = vpop.f32.mrb[1].mxu0  ;;  %v761_v30 = vpop.f32.mrb[1].mxu1 }
 0x152   : > { %v442_v31 = vadd.f32 %v2312_v24, %v441_v29  ;;  %v762_v32 = vadd.f32 %v2312_v24, %v761_v30 }
 0x153   : > { %1081 = vst [vmem:[%s2320_s24 + $0x8] sm:$0xff] %v447_v27  ;;  %1145 = vst [vmem:[%s2320_s24 + $0x208] sm:$0xff] %v767_v28 }
 0x154   : > { %1080 = vst [vmem:[%s2320_s24] sm:$0xff] %v442_v31  ;;  %1144 = vst [vmem:[%s2320_s24 + $0x200] sm:$0xff] %v762_v32  ;;  %v1522_v33 = vpop.f32.mrb[2].mxu0  ;;  %v1618_v34 = vpop.f32.mrb[2].mxu1 }
 0x155   : > { %v457_v35 = vadd.f32 %v1522_v33, %v2312_v24  ;;  %v777_v36 = vadd.f32 %v1618_v34, %v2312_v24  ;;  %v451_v37 = vpop.f32.mrb[3].mxu0  ;;  %v771_v38 = vpop.f32.mrb[3].mxu1 }
 0x156   : > { %v452_v39 = vadd.f32 %v2312_v24, %v451_v37  ;;  %v772_v40 = vadd.f32 %v2312_v24, %v771_v38 }
 0x157   : > { %1083 = vst [vmem:[%s2320_s24 + $0x18] sm:$0xff] %v457_v35  ;;  %1147 = vst [vmem:[%s2320_s24 + $0x218] sm:$0xff] %v777_v36 }
 0x158   : > { %1082 = vst [vmem:[%s2320_s24 + $0x10] sm:$0xff] %v452_v39  ;;  %1146 = vst [vmem:[%s2320_s24 + $0x210] sm:$0xff] %v772_v40  ;;  %v1525_v41 = vpop.f32.mrb[4].mxu0  ;;  %v1621_v42 = vpop.f32.mrb[4].mxu1 }
 0x159   : > { %v467_v43 = vadd.f32 %v1525_v41, %v2312_v24  ;;  %v787_v44 = vadd.f32 %v1621_v42, %v2312_v24  ;;  %v461_v45 = vpop.f32.mrb[5].mxu0  ;;  %v781_v46 = vpop.f32.mrb[5].mxu1 }
 0x15a   : > { %v462_v47 = vadd.f32 %v2312_v24, %v461_v45  ;;  %v782_v48 = vadd.f32 %v2312_v24, %v781_v46 }
 0x15b   : > { %1085 = vst [vmem:[%s2320_s24 + $0x28] sm:$0xff] %v467_v43  ;;  %1149 = vst [vmem:[%s2320_s24 + $0x228] sm:$0xff] %v787_v44 }
 0x15c   : > { %1084 = vst [vmem:[%s2320_s24 + $0x20] sm:$0xff] %v462_v47  ;;  %1148 = vst [vmem:[%s2320_s24 + $0x220] sm:$0xff] %v782_v48  ;;  %v1528_v49 = vpop.f32.mrb[6].mxu0  ;;  %v1624_v50 = vpop.f32.mrb[6].mxu1 }
 0x15d   : > { %v477_v51 = vadd.f32 %v1528_v49, %v2312_v24  ;;  %v797_v52 = vadd.f32 %v1624_v50, %v2312_v24  ;;  %v471_v53 = vpop.f32.mrb[7].mxu0  ;;  %v791_v54 = vpop.f32.mrb[7].mxu1 }
 0x15e   : > { %v472_v55 = vadd.f32 %v2312_v24, %v471_v53  ;;  %v792_v56 = vadd.f32 %v2312_v24, %v791_v54 }
 0x15f   : > { %1087 = vst [vmem:[%s2320_s24 + $0x38] sm:$0xff] %v477_v51  ;;  %1151 = vst [vmem:[%s2320_s24 + $0x238] sm:$0xff] %v797_v52 }
 0x160   : > { %1086 = vst [vmem:[%s2320_s24 + $0x30] sm:$0xff] %v472_v55  ;;  %1150 = vst [vmem:[%s2320_s24 + $0x230] sm:$0xff] %v792_v56  ;;  %v1531_v57 = vpop.f32.mrb[8].mxu0  ;;  %v1627_v58 = vpop.f32.mrb[8].mxu1 }
 0x161   : > { %v487_v59 = vadd.f32 %v1531_v57, %v2312_v24  ;;  %v807_v60 = vadd.f32 %v1627_v58, %v2312_v24  ;;  %v481_v61 = vpop.f32.mrb[9].mxu0  ;;  %v801_v62 = vpop.f32.mrb[9].mxu1 }
 0x162   : > { %v482_v63 = vadd.f32 %v2312_v24, %v481_v61  ;;  %v802_v0 = vadd.f32 %v2312_v24, %v801_v62 }
 0x163   : > { %1089 = vst [vmem:[%s2320_s24 + $0x48] sm:$0xff] %v487_v59  ;;  %1153 = vst [vmem:[%s2320_s24 + $0x248] sm:$0xff] %v807_v60 }
 0x164   : > { %1088 = vst [vmem:[%s2320_s24 + $0x40] sm:$0xff] %v482_v63  ;;  %1152 = vst [vmem:[%s2320_s24 + $0x240] sm:$0xff] %v802_v0  ;;  %v1534_v1 = vpop.f32.mrb[10].mxu0  ;;  %v1630_v2 = vpop.f32.mrb[10].mxu1 }
 0x165   : > { %v497_v3 = vadd.f32 %v1534_v1, %v2312_v24  ;;  %v817_v4 = vadd.f32 %v1630_v2, %v2312_v24  ;;  %v491_v5 = vpop.f32.mrb[11].mxu0  ;;  %v811_v6 = vpop.f32.mrb[11].mxu1 }
 0x166   : > { %v492_v7 = vadd.f32 %v2312_v24, %v491_v5  ;;  %v812_v8 = vadd.f32 %v2312_v24, %v811_v6 }
 0x167   : > { %1091 = vst [vmem:[%s2320_s24 + $0x58] sm:$0xff] %v497_v3  ;;  %1155 = vst [vmem:[%s2320_s24 + $0x258] sm:$0xff] %v817_v4 }
 0x168   : > { %1090 = vst [vmem:[%s2320_s24 + $0x50] sm:$0xff] %v492_v7  ;;  %1154 = vst [vmem:[%s2320_s24 + $0x250] sm:$0xff] %v812_v8  ;;  %v1537_v9 = vpop.f32.mrb[12].mxu0  ;;  %v1633_v10 = vpop.f32.mrb[12].mxu1 }
 0x169   : > { %v507_v11 = vadd.f32 %v1537_v9, %v2312_v24  ;;  %v827_v12 = vadd.f32 %v1633_v10, %v2312_v24  ;;  %v501_v13 = vpop.f32.mrb[13].mxu0  ;;  %v821_v14 = vpop.f32.mrb[13].mxu1 }
 0x16a   : > { %v502_v15 = vadd.f32 %v2312_v24, %v501_v13  ;;  %v822_v16 = vadd.f32 %v2312_v24, %v821_v14 }
 0x16b   : > { %1093 = vst [vmem:[%s2320_s24 + $0x68] sm:$0xff] %v507_v11  ;;  %1157 = vst [vmem:[%s2320_s24 + $0x268] sm:$0xff] %v827_v12 }
 0x16c   : > { %1092 = vst [vmem:[%s2320_s24 + $0x60] sm:$0xff] %v502_v15  ;;  %1156 = vst [vmem:[%s2320_s24 + $0x260] sm:$0xff] %v822_v16  ;;  %v1540_v17 = vpop.f32.mrb[14].mxu0  ;;  %v1636_v18 = vpop.f32.mrb[14].mxu1 }
 0x16d   : > { %v517_v19 = vadd.f32 %v1540_v17, %v2312_v24  ;;  %v837_v20 = vadd.f32 %v1636_v18, %v2312_v24  ;;  %v511_v21 = vpop.f32.mrb[15].mxu0  ;;  %v831_v22 = vpop.f32.mrb[15].mxu1 }
 0x16e   : > { %v512_v23 = vadd.f32 %v2312_v24, %v511_v21  ;;  %v832_v25 = vadd.f32 %v2312_v24, %v831_v22 }
 0x16f   : > { %1095 = vst [vmem:[%s2320_s24 + $0x78] sm:$0xff] %v517_v19  ;;  %1159 = vst [vmem:[%s2320_s24 + $0x278] sm:$0xff] %v837_v20 }
 0x170   : > { %1094 = vst [vmem:[%s2320_s24 + $0x70] sm:$0xff] %v512_v23  ;;  %1158 = vst [vmem:[%s2320_s24 + $0x270] sm:$0xff] %v832_v25  ;;  %v1543_v26 = vpop.f32.mrb[16].mxu0  ;;  %v1639_v27 = vpop.f32.mrb[16].mxu1 }
 0x171   : > { %v527_v28 = vadd.f32 %v1543_v26, %v2312_v24  ;;  %v847_v29 = vadd.f32 %v1639_v27, %v2312_v24  ;;  %v521_v30 = vpop.f32.mrb[17].mxu0  ;;  %v841_v31 = vpop.f32.mrb[17].mxu1 }
 0x172   : > { %v522_v32 = vadd.f32 %v2312_v24, %v521_v30  ;;  %v842_v33 = vadd.f32 %v2312_v24, %v841_v31 }
 0x173   : > { %1097 = vst [vmem:[%s2320_s24 + $0x88] sm:$0xff] %v527_v28  ;;  %1161 = vst [vmem:[%s2320_s24 + $0x288] sm:$0xff] %v847_v29 }
 0x174   : > { %1096 = vst [vmem:[%s2320_s24 + $0x80] sm:$0xff] %v522_v32  ;;  %1160 = vst [vmem:[%s2320_s24 + $0x280] sm:$0xff] %v842_v33  ;;  %v1546_v34 = vpop.f32.mrb[18].mxu0  ;;  %v1642_v35 = vpop.f32.mrb[18].mxu1 }
 0x175   : > { %v537_v36 = vadd.f32 %v1546_v34, %v2312_v24  ;;  %v857_v37 = vadd.f32 %v1642_v35, %v2312_v24  ;;  %v531_v38 = vpop.f32.mrb[19].mxu0  ;;  %v851_v39 = vpop.f32.mrb[19].mxu1 }
 0x176   : > { %v532_v40 = vadd.f32 %v2312_v24, %v531_v38  ;;  %v852_v41 = vadd.f32 %v2312_v24, %v851_v39 }
 0x177   : > { %1099 = vst [vmem:[%s2320_s24 + $0x98] sm:$0xff] %v537_v36  ;;  %1163 = vst [vmem:[%s2320_s24 + $0x298] sm:$0xff] %v857_v37 }
 0x178   : > { %1098 = vst [vmem:[%s2320_s24 + $0x90] sm:$0xff] %v532_v40  ;;  %1162 = vst [vmem:[%s2320_s24 + $0x290] sm:$0xff] %v852_v41  ;;  %v1549_v42 = vpop.f32.mrb[20].mxu0  ;;  %v1645_v43 = vpop.f32.mrb[20].mxu1 }
 0x179   : > { %v547_v44 = vadd.f32 %v1549_v42, %v2312_v24  ;;  %v867_v45 = vadd.f32 %v1645_v43, %v2312_v24  ;;  %v541_v46 = vpop.f32.mrb[21].mxu0  ;;  %v861_v47 = vpop.f32.mrb[21].mxu1 }
 0x17a   : > { %v542_v48 = vadd.f32 %v2312_v24, %v541_v46  ;;  %v862_v49 = vadd.f32 %v2312_v24, %v861_v47 }
 0x17b   : > { %1101 = vst [vmem:[%s2320_s24 + $0xa8] sm:$0xff] %v547_v44  ;;  %1165 = vst [vmem:[%s2320_s24 + $0x2a8] sm:$0xff] %v867_v45 }
 0x17c   : > { %1100 = vst [vmem:[%s2320_s24 + $0xa0] sm:$0xff] %v542_v48  ;;  %1164 = vst [vmem:[%s2320_s24 + $0x2a0] sm:$0xff] %v862_v49  ;;  %v1552_v50 = vpop.f32.mrb[22].mxu0  ;;  %v1648_v51 = vpop.f32.mrb[22].mxu1 }
 0x17d   : > { %v557_v52 = vadd.f32 %v1552_v50, %v2312_v24  ;;  %v877_v53 = vadd.f32 %v1648_v51, %v2312_v24  ;;  %v551_v54 = vpop.f32.mrb[23].mxu0  ;;  %v871_v55 = vpop.f32.mrb[23].mxu1 }
 0x17e   : > { %v552_v56 = vadd.f32 %v2312_v24, %v551_v54  ;;  %v872_v57 = vadd.f32 %v2312_v24, %v871_v55 }
 0x17f   : > { %1103 = vst [vmem:[%s2320_s24 + $0xb8] sm:$0xff] %v557_v52  ;;  %1167 = vst [vmem:[%s2320_s24 + $0x2b8] sm:$0xff] %v877_v53 }
 0x180   : > { %1102 = vst [vmem:[%s2320_s24 + $0xb0] sm:$0xff] %v552_v56  ;;  %1166 = vst [vmem:[%s2320_s24 + $0x2b0] sm:$0xff] %v872_v57  ;;  %v1555_v58 = vpop.f32.mrb[24].mxu0  ;;  %v1651_v59 = vpop.f32.mrb[24].mxu1 }
 0x181   : > { %v567_v60 = vadd.f32 %v1555_v58, %v2312_v24  ;;  %v887_v61 = vadd.f32 %v1651_v59, %v2312_v24  ;;  %v561_v62 = vpop.f32.mrb[25].mxu0  ;;  %v881_v63 = vpop.f32.mrb[25].mxu1 }
 0x182   : > { %v562_v0 = vadd.f32 %v2312_v24, %v561_v62  ;;  %v882_v1 = vadd.f32 %v2312_v24, %v881_v63 }
 0x183   : > { %1105 = vst [vmem:[%s2320_s24 + $0xc8] sm:$0xff] %v567_v60  ;;  %1169 = vst [vmem:[%s2320_s24 + $0x2c8] sm:$0xff] %v887_v61 }
 0x184   : > { %1104 = vst [vmem:[%s2320_s24 + $0xc0] sm:$0xff] %v562_v0  ;;  %1168 = vst [vmem:[%s2320_s24 + $0x2c0] sm:$0xff] %v882_v1  ;;  %v1558_v2 = vpop.f32.mrb[26].mxu0  ;;  %v1654_v3 = vpop.f32.mrb[26].mxu1 }
 0x185   : > { %v577_v4 = vadd.f32 %v1558_v2, %v2312_v24  ;;  %v897_v5 = vadd.f32 %v1654_v3, %v2312_v24  ;;  %v571_v6 = vpop.f32.mrb[27].mxu0  ;;  %v891_v7 = vpop.f32.mrb[27].mxu1 }
 0x186   : > { %v572_v8 = vadd.f32 %v2312_v24, %v571_v6  ;;  %v892_v9 = vadd.f32 %v2312_v24, %v891_v7 }
 0x187   : > { %1107 = vst [vmem:[%s2320_s24 + $0xd8] sm:$0xff] %v577_v4  ;;  %1171 = vst [vmem:[%s2320_s24 + $0x2d8] sm:$0xff] %v897_v5 }
 0x188   : > { %1106 = vst [vmem:[%s2320_s24 + $0xd0] sm:$0xff] %v572_v8  ;;  %1170 = vst [vmem:[%s2320_s24 + $0x2d0] sm:$0xff] %v892_v9  ;;  %v1561_v10 = vpop.f32.mrb[28].mxu0  ;;  %v1657_v11 = vpop.f32.mrb[28].mxu1 }
 0x189   : > { %v587_v12 = vadd.f32 %v1561_v10, %v2312_v24  ;;  %v907_v13 = vadd.f32 %v1657_v11, %v2312_v24  ;;  %v581_v14 = vpop.f32.mrb[29].mxu0  ;;  %v901_v15 = vpop.f32.mrb[29].mxu1 }
 0x18a   : > { %v582_v16 = vadd.f32 %v2312_v24, %v581_v14  ;;  %v902_v17 = vadd.f32 %v2312_v24, %v901_v15 }
 0x18b   : > { %1109 = vst [vmem:[%s2320_s24 + $0xe8] sm:$0xff] %v587_v12  ;;  %1173 = vst [vmem:[%s2320_s24 + $0x2e8] sm:$0xff] %v907_v13 }
 0x18c   : > { %1108 = vst [vmem:[%s2320_s24 + $0xe0] sm:$0xff] %v582_v16  ;;  %1172 = vst [vmem:[%s2320_s24 + $0x2e0] sm:$0xff] %v902_v17  ;;  %v1564_v18 = vpop.f32.mrb[30].mxu0  ;;  %v1660_v19 = vpop.f32.mrb[30].mxu1 }
 0x18d   : > { %v597_v20 = vadd.f32 %v1564_v18, %v2312_v24  ;;  %v917_v21 = vadd.f32 %v1660_v19, %v2312_v24  ;;  %v591_v22 = vpop.f32.mrb[31].mxu0  ;;  %v911_v23 = vpop.f32.mrb[31].mxu1 }
 0x18e   : > { %v592_v25 = vadd.f32 %v2312_v24, %v591_v22  ;;  %v912_v26 = vadd.f32 %v2312_v24, %v911_v23 }
 0x18f   : > { %1111 = vst [vmem:[%s2320_s24 + $0xf8] sm:$0xff] %v597_v20  ;;  %1175 = vst [vmem:[%s2320_s24 + $0x2f8] sm:$0xff] %v917_v21 }
 0x190   : > { %1110 = vst [vmem:[%s2320_s24 + $0xf0] sm:$0xff] %v592_v25  ;;  %1174 = vst [vmem:[%s2320_s24 + $0x2f0] sm:$0xff] %v912_v26  ;;  %v1567_v27 = vpop.f32.mrb[32].mxu0  ;;  %v1663_v28 = vpop.f32.mrb[32].mxu1 }
 0x191   : > { %v607_v29 = vadd.f32 %v1567_v27, %v2312_v24  ;;  %v927_v30 = vadd.f32 %v1663_v28, %v2312_v24  ;;  %v601_v31 = vpop.f32.mrb[33].mxu0  ;;  %v921_v32 = vpop.f32.mrb[33].mxu1 }
 0x192   : > { %v602_v33 = vadd.f32 %v2312_v24, %v601_v31  ;;  %v922_v34 = vadd.f32 %v2312_v24, %v921_v32 }
 0x193   : > { %1113 = vst [vmem:[%s2320_s24 + $0x108] sm:$0xff] %v607_v29  ;;  %1177 = vst [vmem:[%s2320_s24 + $0x308] sm:$0xff] %v927_v30 }
 0x194   : > { %1112 = vst [vmem:[%s2320_s24 + $0x100] sm:$0xff] %v602_v33  ;;  %1176 = vst [vmem:[%s2320_s24 + $0x300] sm:$0xff] %v922_v34  ;;  %v1570_v35 = vpop.f32.mrb[34].mxu0  ;;  %v1666_v36 = vpop.f32.mrb[34].mxu1 }
 0x195   : > { %v617_v37 = vadd.f32 %v1570_v35, %v2312_v24  ;;  %v937_v38 = vadd.f32 %v1666_v36, %v2312_v24  ;;  %v611_v39 = vpop.f32.mrb[35].mxu0  ;;  %v931_v40 = vpop.f32.mrb[35].mxu1 }
 0x196   : > { %v612_v41 = vadd.f32 %v2312_v24, %v611_v39  ;;  %v932_v42 = vadd.f32 %v2312_v24, %v931_v40 }
 0x197   : > { %1115 = vst [vmem:[%s2320_s24 + $0x118] sm:$0xff] %v617_v37  ;;  %1179 = vst [vmem:[%s2320_s24 + $0x318] sm:$0xff] %v937_v38 }
 0x198   : > { %1114 = vst [vmem:[%s2320_s24 + $0x110] sm:$0xff] %v612_v41  ;;  %1178 = vst [vmem:[%s2320_s24 + $0x310] sm:$0xff] %v932_v42  ;;  %v1573_v43 = vpop.f32.mrb[36].mxu0  ;;  %v1669_v44 = vpop.f32.mrb[36].mxu1 }
 0x199   : > { %v627_v45 = vadd.f32 %v1573_v43, %v2312_v24  ;;  %v947_v46 = vadd.f32 %v1669_v44, %v2312_v24  ;;  %v621_v47 = vpop.f32.mrb[37].mxu0  ;;  %v941_v48 = vpop.f32.mrb[37].mxu1 }
 0x19a   : > { %v622_v49 = vadd.f32 %v2312_v24, %v621_v47  ;;  %v942_v50 = vadd.f32 %v2312_v24, %v941_v48 }
 0x19b   : > { %1117 = vst [vmem:[%s2320_s24 + $0x128] sm:$0xff] %v627_v45  ;;  %1181 = vst [vmem:[%s2320_s24 + $0x328] sm:$0xff] %v947_v46 }
 0x19c   : > { %1116 = vst [vmem:[%s2320_s24 + $0x120] sm:$0xff] %v622_v49  ;;  %1180 = vst [vmem:[%s2320_s24 + $0x320] sm:$0xff] %v942_v50  ;;  %v1576_v51 = vpop.f32.mrb[38].mxu0  ;;  %v1672_v52 = vpop.f32.mrb[38].mxu1 }
 0x19d   : > { %v637_v53 = vadd.f32 %v1576_v51, %v2312_v24  ;;  %v957_v54 = vadd.f32 %v1672_v52, %v2312_v24  ;;  %v631_v55 = vpop.f32.mrb[39].mxu0  ;;  %v951_v56 = vpop.f32.mrb[39].mxu1 }
 0x19e   : > { %v632_v57 = vadd.f32 %v2312_v24, %v631_v55  ;;  %v952_v58 = vadd.f32 %v2312_v24, %v951_v56 }
 0x19f   : > { %1119 = vst [vmem:[%s2320_s24 + $0x138] sm:$0xff] %v637_v53  ;;  %1183 = vst [vmem:[%s2320_s24 + $0x338] sm:$0xff] %v957_v54 }
 0x1a0   : > { %1118 = vst [vmem:[%s2320_s24 + $0x130] sm:$0xff] %v632_v57  ;;  %1182 = vst [vmem:[%s2320_s24 + $0x330] sm:$0xff] %v952_v58  ;;  %v1579_v59 = vpop.f32.mrb[40].mxu0  ;;  %v1675_v60 = vpop.f32.mrb[40].mxu1 }
 0x1a1   : > { %v647_v61 = vadd.f32 %v1579_v59, %v2312_v24  ;;  %v967_v62 = vadd.f32 %v1675_v60, %v2312_v24  ;;  %v641_v63 = vpop.f32.mrb[41].mxu0  ;;  %v961_v0 = vpop.f32.mrb[41].mxu1 }
 0x1a2   : > { %v642_v1 = vadd.f32 %v2312_v24, %v641_v63  ;;  %v962_v2 = vadd.f32 %v2312_v24, %v961_v0 }
 0x1a3   : > { %1121 = vst [vmem:[%s2320_s24 + $0x148] sm:$0xff] %v647_v61  ;;  %1185 = vst [vmem:[%s2320_s24 + $0x348] sm:$0xff] %v967_v62 }
 0x1a4   : > { %1120 = vst [vmem:[%s2320_s24 + $0x140] sm:$0xff] %v642_v1  ;;  %1184 = vst [vmem:[%s2320_s24 + $0x340] sm:$0xff] %v962_v2  ;;  %v1582_v3 = vpop.f32.mrb[42].mxu0  ;;  %v1678_v4 = vpop.f32.mrb[42].mxu1 }
 0x1a5   : > { %v657_v5 = vadd.f32 %v1582_v3, %v2312_v24  ;;  %v977_v6 = vadd.f32 %v1678_v4, %v2312_v24  ;;  %v651_v7 = vpop.f32.mrb[43].mxu0  ;;  %v971_v8 = vpop.f32.mrb[43].mxu1 }
 0x1a6   : > { %v652_v9 = vadd.f32 %v2312_v24, %v651_v7  ;;  %v972_v10 = vadd.f32 %v2312_v24, %v971_v8 }
 0x1a7   : > { %1123 = vst [vmem:[%s2320_s24 + $0x158] sm:$0xff] %v657_v5  ;;  %1187 = vst [vmem:[%s2320_s24 + $0x358] sm:$0xff] %v977_v6 }
 0x1a8   : > { %1122 = vst [vmem:[%s2320_s24 + $0x150] sm:$0xff] %v652_v9  ;;  %1186 = vst [vmem:[%s2320_s24 + $0x350] sm:$0xff] %v972_v10  ;;  %v1585_v11 = vpop.f32.mrb[44].mxu0  ;;  %v1681_v12 = vpop.f32.mrb[44].mxu1 }
 0x1a9   : > { %v667_v13 = vadd.f32 %v1585_v11, %v2312_v24  ;;  %v987_v14 = vadd.f32 %v1681_v12, %v2312_v24  ;;  %v661_v15 = vpop.f32.mrb[45].mxu0  ;;  %v981_v16 = vpop.f32.mrb[45].mxu1 }
 0x1aa   : > { %v662_v17 = vadd.f32 %v2312_v24, %v661_v15  ;;  %v982_v18 = vadd.f32 %v2312_v24, %v981_v16 }
 0x1ab   : > { %1125 = vst [vmem:[%s2320_s24 + $0x168] sm:$0xff] %v667_v13  ;;  %1189 = vst [vmem:[%s2320_s24 + $0x368] sm:$0xff] %v987_v14 }
 0x1ac   : > { %1124 = vst [vmem:[%s2320_s24 + $0x160] sm:$0xff] %v662_v17  ;;  %1188 = vst [vmem:[%s2320_s24 + $0x360] sm:$0xff] %v982_v18  ;;  %v1588_v19 = vpop.f32.mrb[46].mxu0  ;;  %v1684_v20 = vpop.f32.mrb[46].mxu1 }
 0x1ad   : > { %v677_v21 = vadd.f32 %v1588_v19, %v2312_v24  ;;  %v997_v22 = vadd.f32 %v1684_v20, %v2312_v24  ;;  %v671_v23 = vpop.f32.mrb[47].mxu0  ;;  %v991_v25 = vpop.f32.mrb[47].mxu1 }
 0x1ae   : > { %v672_v26 = vadd.f32 %v2312_v24, %v671_v23  ;;  %v992_v27 = vadd.f32 %v2312_v24, %v991_v25 }
 0x1af   : > { %1127 = vst [vmem:[%s2320_s24 + $0x178] sm:$0xff] %v677_v21  ;;  %1191 = vst [vmem:[%s2320_s24 + $0x378] sm:$0xff] %v997_v22 }
 0x1b0   : > { %1126 = vst [vmem:[%s2320_s24 + $0x170] sm:$0xff] %v672_v26  ;;  %1190 = vst [vmem:[%s2320_s24 + $0x370] sm:$0xff] %v992_v27  ;;  %v1591_v28 = vpop.f32.mrb[48].mxu0  ;;  %v1687_v29 = vpop.f32.mrb[48].mxu1 }
 0x1b1   : > { %v687_v30 = vadd.f32 %v1591_v28, %v2312_v24  ;;  %v1007_v31 = vadd.f32 %v1687_v29, %v2312_v24  ;;  %v681_v32 = vpop.f32.mrb[49].mxu0  ;;  %v1001_v33 = vpop.f32.mrb[49].mxu1 }
 0x1b2   : > { %v682_v34 = vadd.f32 %v2312_v24, %v681_v32  ;;  %v1002_v35 = vadd.f32 %v2312_v24, %v1001_v33 }
 0x1b3   : > { %1129 = vst [vmem:[%s2320_s24 + $0x188] sm:$0xff] %v687_v30  ;;  %1193 = vst [vmem:[%s2320_s24 + $0x388] sm:$0xff] %v1007_v31 }
 0x1b4   : > { %1128 = vst [vmem:[%s2320_s24 + $0x180] sm:$0xff] %v682_v34  ;;  %1192 = vst [vmem:[%s2320_s24 + $0x380] sm:$0xff] %v1002_v35  ;;  %v1594_v36 = vpop.f32.mrb[50].mxu0  ;;  %v1690_v37 = vpop.f32.mrb[50].mxu1 }
 0x1b5   : > { %v697_v38 = vadd.f32 %v1594_v36, %v2312_v24  ;;  %v1017_v39 = vadd.f32 %v1690_v37, %v2312_v24  ;;  %v691_v40 = vpop.f32.mrb[51].mxu0  ;;  %v1011_v41 = vpop.f32.mrb[51].mxu1 }
 0x1b6   : > { %v692_v42 = vadd.f32 %v2312_v24, %v691_v40  ;;  %v1012_v43 = vadd.f32 %v2312_v24, %v1011_v41 }
 0x1b7   : > { %1131 = vst [vmem:[%s2320_s24 + $0x198] sm:$0xff] %v697_v38  ;;  %1195 = vst [vmem:[%s2320_s24 + $0x398] sm:$0xff] %v1017_v39 }
 0x1b8   : > { %1130 = vst [vmem:[%s2320_s24 + $0x190] sm:$0xff] %v692_v42  ;;  %1194 = vst [vmem:[%s2320_s24 + $0x390] sm:$0xff] %v1012_v43  ;;  %v1597_v44 = vpop.f32.mrb[52].mxu0  ;;  %v1693_v45 = vpop.f32.mrb[52].mxu1 }
 0x1b9   : > { %v707_v46 = vadd.f32 %v1597_v44, %v2312_v24  ;;  %v1027_v47 = vadd.f32 %v1693_v45, %v2312_v24  ;;  %v701_v48 = vpop.f32.mrb[53].mxu0  ;;  %v1021_v49 = vpop.f32.mrb[53].mxu1 }
 0x1ba   : > { %v702_v50 = vadd.f32 %v2312_v24, %v701_v48  ;;  %v1022_v51 = vadd.f32 %v2312_v24, %v1021_v49 }
 0x1bb   : > { %1133 = vst [vmem:[%s2320_s24 + $0x1a8] sm:$0xff] %v707_v46  ;;  %1197 = vst [vmem:[%s2320_s24 + $0x3a8] sm:$0xff] %v1027_v47 }
 0x1bc   : > { %1132 = vst [vmem:[%s2320_s24 + $0x1a0] sm:$0xff] %v702_v50  ;;  %1196 = vst [vmem:[%s2320_s24 + $0x3a0] sm:$0xff] %v1022_v51  ;;  %v1600_v52 = vpop.f32.mrb[54].mxu0  ;;  %v1696_v53 = vpop.f32.mrb[54].mxu1 }
 0x1bd   : > { %v717_v54 = vadd.f32 %v1600_v52, %v2312_v24  ;;  %v1037_v55 = vadd.f32 %v1696_v53, %v2312_v24  ;;  %v711_v56 = vpop.f32.mrb[55].mxu0  ;;  %v1031_v57 = vpop.f32.mrb[55].mxu1 }
 0x1be   : > { %v712_v58 = vadd.f32 %v2312_v24, %v711_v56  ;;  %v1032_v59 = vadd.f32 %v2312_v24, %v1031_v57 }
 0x1bf   : > { %1135 = vst [vmem:[%s2320_s24 + $0x1b8] sm:$0xff] %v717_v54  ;;  %1199 = vst [vmem:[%s2320_s24 + $0x3b8] sm:$0xff] %v1037_v55 }
 0x1c0   : > { %1134 = vst [vmem:[%s2320_s24 + $0x1b0] sm:$0xff] %v712_v58  ;;  %1198 = vst [vmem:[%s2320_s24 + $0x3b0] sm:$0xff] %v1032_v59  ;;  %v1603_v60 = vpop.f32.mrb[56].mxu0  ;;  %v1699_v61 = vpop.f32.mrb[56].mxu1 }
 0x1c1   : > { %v727_v62 = vadd.f32 %v1603_v60, %v2312_v24  ;;  %v1047_v63 = vadd.f32 %v1699_v61, %v2312_v24  ;;  %v721_v0 = vpop.f32.mrb[57].mxu0  ;;  %v1041_v1 = vpop.f32.mrb[57].mxu1 }
 0x1c2   : > { %v722_v2 = vadd.f32 %v2312_v24, %v721_v0  ;;  %v1042_v3 = vadd.f32 %v2312_v24, %v1041_v1 }
 0x1c3   : > { %1137 = vst [vmem:[%s2320_s24 + $0x1c8] sm:$0xff] %v727_v62  ;;  %1201 = vst [vmem:[%s2320_s24 + $0x3c8] sm:$0xff] %v1047_v63 }
 0x1c4   : > { %1136 = vst [vmem:[%s2320_s24 + $0x1c0] sm:$0xff] %v722_v2  ;;  %1200 = vst [vmem:[%s2320_s24 + $0x3c0] sm:$0xff] %v1042_v3  ;;  %v1606_v4 = vpop.f32.mrb[58].mxu0  ;;  %v1702_v5 = vpop.f32.mrb[58].mxu1 }
 0x1c5   : > { %v737_v6 = vadd.f32 %v1606_v4, %v2312_v24  ;;  %v1057_v7 = vadd.f32 %v1702_v5, %v2312_v24  ;;  %v731_v8 = vpop.f32.mrb[59].mxu0  ;;  %v1051_v9 = vpop.f32.mrb[59].mxu1 }
 0x1c6   : > { %v732_v10 = vadd.f32 %v2312_v24, %v731_v8  ;;  %v1052_v11 = vadd.f32 %v2312_v24, %v1051_v9 }
 0x1c7   : > { %1139 = vst [vmem:[%s2320_s24 + $0x1d8] sm:$0xff] %v737_v6  ;;  %1203 = vst [vmem:[%s2320_s24 + $0x3d8] sm:$0xff] %v1057_v7 }
 0x1c8   : > { %1138 = vst [vmem:[%s2320_s24 + $0x1d0] sm:$0xff] %v732_v10  ;;  %1202 = vst [vmem:[%s2320_s24 + $0x3d0] sm:$0xff] %v1052_v11  ;;  %v1609_v12 = vpop.f32.mrb[60].mxu0  ;;  %v1705_v13 = vpop.f32.mrb[60].mxu1 }
 0x1c9   : > { %v747_v14 = vadd.f32 %v1609_v12, %v2312_v24  ;;  %v1067_v15 = vadd.f32 %v1705_v13, %v2312_v24  ;;  %v741_v16 = vpop.f32.mrb[61].mxu0  ;;  %v1061_v17 = vpop.f32.mrb[61].mxu1 }
 0x1ca   : > { %v742_v18 = vadd.f32 %v2312_v24, %v741_v16  ;;  %v1062_v19 = vadd.f32 %v2312_v24, %v1061_v17 }
 0x1cb   : > { %1141 = vst [vmem:[%s2320_s24 + $0x1e8] sm:$0xff] %v747_v14  ;;  %1205 = vst [vmem:[%s2320_s24 + $0x3e8] sm:$0xff] %v1067_v15 }
 0x1cc   : > { %1140 = vst [vmem:[%s2320_s24 + $0x1e0] sm:$0xff] %v742_v18  ;;  %1204 = vst [vmem:[%s2320_s24 + $0x3e0] sm:$0xff] %v1062_v19  ;;  %v1612_v20 = vpop.f32.mrb[62].mxu0  ;;  %v1708_v21 = vpop.f32.mrb[62].mxu1 }
 0x1cd   : > { %v757_v22 = vadd.f32 %v1612_v20, %v2312_v24  ;;  %v1077_v23 = vadd.f32 %v1708_v21, %v2312_v24  ;;  %v751_v25 = vpop.f32.mrb[63].mxu0  ;;  %v1071_v26 = vpop.f32.mrb[63].mxu1 }
 0x1ce   : > { %v752_v27 = vadd.f32 %v2312_v24, %v751_v25  ;;  %v1072_v28 = vadd.f32 %v2312_v24, %v1071_v26 }
 0x1cf   : > { %1143 = vst [vmem:[%s2320_s24 + $0x1f8] sm:$0xff] %v757_v22  ;;  %1207 = vst [vmem:[%s2320_s24 + $0x3f8] sm:$0xff] %v1077_v23 }
 0x1d0   : > { %1142 = vst [vmem:[%s2320_s24 + $0x1f0] sm:$0xff] %v752_v27  ;;  %1206 = vst [vmem:[%s2320_s24 + $0x3f0] sm:$0xff] %v1072_v28 }
 0x1d1   : > { %1905 = shalt.err (!%p1902_p5)
}
 0x1d2   : > { %s1906_s6 = scalar_lea.hbm %s2573_s18, 16384  ;;  %s1910_s19 = scalar_lea.hbm %s2633_s3, 32768 }
 0x1d3   : > { %p1907_p9 = scmp.ne.s32.totalorder %s2573_s18, %s1906_s6  ;;  %p1911_p3 = scmp.lt.u32.totalorder %s2573_s18, %s2633_s3 }
 0x1d4   : > { %p1912_p7 = scmp.lt.u32.totalorder %s1910_s19, %s1906_s6  ;;  %p1914_p4 = scmp.lt.u32.totalorder %s1906_s6, %s2573_s18 }
 0x1d5   : > { %p1908_p1 = pnand %p1907_p9, %p2106_p10 }
 0x1d6   : > { %p1913_p13 = por %p1912_p7, %p1911_p3 }
 0x1d7   : > { %p1909_p2 = pneg %p1908_p1 }
 0x1d8   : > { %p1915_p6 = por %p1914_p4, %p1913_p13 }
 0x1da   : > { %p1916_p8 = pnand %p1915_p6, %p1909_p2 }
 0x1dc   : > { %1919 = shalt.err (!%p1916_p8)
}
 0x1dd   : > { %s1985_s24 = smov 128   ;;  %s1986_s10 = smov 8  }
 0x1de   : > { %1763 = dma.vmem_to_hbm [thread:$0]  (%p2106_p10), %s2575_s11, 16384, %s2573_s18, %s1209_s25, %s1985_s24, %s1985_s24, %s1986_s10  }
 0x1df PF: > { %s1239_s15 = sand.u32 1, %s1958_s12   ;;  %p2651_p12 = scmp.ne.s32.totalorder %s2641_s23, 0 }
 0x1e0   : > { %p2652_p11 = scmp.ge.s32.totalorder %s1978_s17, 2  ;;  %s1240_s9 = scalar_lea.sflag [#allocation4], %s1239_s15 }
 0x1e2   : > { %p1774_p0 = pnand %p2652_p11, %p2651_p12 }
 0x1e4   : > { %1953 = dma.done.wait (!%p1774_p0), %s1240_s9, 16384  }
 0x1e5   : > { %1955 = vsyncadd (!%p1774_p0), %s1240_s9, 4294950912  ;;  %s20_s17 = sadd.s32 1, %s1978_s17   ;;  %s2653_s12 = smov %s1962_s13 }
 0x1e6   : > { %p17_p5 = scmp.ge.s32.totalorder %s20_s17, 4   ;;  %s2654_s13 = smov %s1966_s14 }
 0x1e7   : > { %s2655_s14 = smov %s2115_s5  ;;  %s2656_s15 = smov %s1974_s16 }
 0x1e8   : > { %s2657_s16 = smov %s2659_s28  ;;  %19 = sbr.rel (!%p17_p5) target bundleno = 7 (0x7), region = 81 }
 0x1ef   :  { %1245 = vsyncpa [#allocation3], 1 }
 0x1f0   :  { %1247 = vsyncpa [#allocation3 + $0x1], 1 }
 0x1f1   :  { %1248 = vsyncpa [#allocation6], 1 }
 0x1f2   :  { %1249 = vsyncpa [#allocation4], 1 }
 0x1f3   :  { %1251 = vsyncpa [#allocation4 + $0x1], 1 }

</bundles_post_ra>
